<compile_context>
chip_gen: v5e
topology: v5e:2x2
jax: 0.10.0
libtpu: 0.0.40
codegen_flags: <defaults>
</compile_context>

<pallas_src>
import functools

import jax
import jax.numpy as jnp
from jax.experimental import pallas as pl
from jax.experimental.pallas import tpu as pltpu


def _resdowns_kernel(x_ref, w_ref, b_ref, o_ref):
    # x_ref: (Cin, TP)   pixel slab, pixels on the lane dim
    # w_ref: (Cout, Cin) conv weight with BN scale already folded in
    # b_ref: (Cout, 1)   folded BN bias
    # o_ref: (Cout, TP)
    y = jnp.dot(w_ref[...], x_ref[...], preferred_element_type=jnp.float32)
    o_ref[...] = (y + b_ref[...]).astype(o_ref.dtype)


def _pick_tile(p, cin, cout, budget_bytes=4 * 1024 * 1024):
    """Pick a lane-dense pixel tile.

    Returns (tile_p, p_padded). If the whole image fits under the per-slab
    budget we take it in one step (tile == full last dim, always legal);
    otherwise we use the largest multiple of 128 under the budget and pad the
    pixel dim up to a multiple of it. Budget keeps double-buffered
    inputs + outputs well under v5e's 16 MiB default scoped VMEM (and v7x's
    64 MiB physical VMEM) even for large channel counts.
    """
    per_lane_bytes = max(cin, cout) * 4  # f32
    cap = max(128, (budget_bytes // per_lane_bytes) // 128 * 128)
    if p <= cap:
        return p, p
    p_pad = pl.cdiv(p, cap) * cap
    return cap, p_pad


def _conv1x1_bn_pallas(x_flat, w_fold, bias, tile_p, p_pad):
    """x_flat: (N, Cin, P_pad) f32, w_fold: (Cout, Cin), bias: (Cout, 1)."""
    N, cin, _ = x_flat.shape
    cout = w_fold.shape[0]
    grid = (N, p_pad // tile_p)

    return pl.pallas_call(
        _resdowns_kernel,
        out_shape=jax.ShapeDtypeStruct((N, cout, p_pad), jnp.float32),
        grid=grid,
        in_specs=[
            # N dim squeezed away -> kernel sees (Cin, tile_p)
            pl.BlockSpec((None, cin, tile_p), lambda n, p: (n, 0, p)),
            pl.BlockSpec((cout, cin), lambda n, p: (0, 0)),
            pl.BlockSpec((cout, 1), lambda n, p: (0, 0)),
        ],
        out_specs=pl.BlockSpec((None, cout, tile_p), lambda n, p: (n, 0, p)),
        compiler_params=pltpu.CompilerParams(
            dimension_semantics=("parallel", "parallel")
        ),
    )(x_flat, w_fold, bias)


@functools.partial(jax.jit, static_argnames=("eps",))
def resdowns_forward(x_nchw, conv_w, gamma, beta, running_mean, running_var,
                     eps=1e-5):
    """Forward pass of ResDownS.

    x_nchw : (N, Cin, H, W)  float32
    conv_w : (Cout, Cin)     1x1 conv weight (kernel dims squeezed)
    gamma, beta, running_mean, running_var : (Cout,)
    """
    N, Cin, H, W = x_nchw.shape
    Cout = conv_w.shape[0]

    # Fold BN (inference) into the conv weight + a per-channel bias.
    scale = gamma / jnp.sqrt(running_var + eps)                 # (Cout,)
    w_fold = (conv_w * scale[:, None]).astype(jnp.float32)      # (Cout, Cin)
    bias = (beta - running_mean * scale).reshape(Cout, 1).astype(jnp.float32)

    # Crop BEFORE the conv: 1x1 conv + BN are per-pixel, so the module's
    # post-conv crop commutes exactly. This fuses the crop (only the
    # surviving interior pixels are convolved and written to HBM).
    if W < 20:
        x_nchw = x_nchw[:, :, 4:-4, 4:-4]
        H, W = H - 8, W - 8

    P = H * W
    x_flat = x_nchw.reshape(N, Cin, P)        # free reshape, stays NCHW-ordered

    tile_p, p_pad = _pick_tile(P, Cin, Cout)
    if p_pad != P:
        x_flat = jnp.pad(x_flat, ((0, 0), (0, 0), (0, p_pad - P)))

    y_flat = _conv1x1_bn_pallas(x_flat, w_fold, bias, tile_p, p_pad)

    if p_pad != P:
        y_flat = y_flat[:, :, :P]
    return y_flat.reshape(N, Cout, H, W)      # free reshape, already NCHW


def _reference(x_nchw, conv_w, gamma, beta, running_mean, running_var,
               eps=1e-5):
    # Plain-JAX reference of the same (eval-mode) semantics, crop after conv
    # exactly like the PyTorch module.
    y = jnp.einsum("nchw,oc->nohw", x_nchw, conv_w)
    scale = gamma / jnp.sqrt(running_var + eps)
    bias = beta - running_mean * scale
    y = y * scale[None, :, None, None] + bias[None, :, None, None]
    if x_nchw.shape[3] < 20:
        y = y[:, :, 4:-4, 4:-4]
    return y


if __name__ == "__main__":
    key = jax.random.PRNGKey(0)
    k_x, k_w, k_g, k_b, k_m, k_v = jax.random.split(key, 6)

    N, Cin, H, W = 2, 4, 16, 16   # inplane=4
    Cout = 8                      # outplane=8

    x = jax.random.normal(k_x, (N, Cin, H, W), dtype=jnp.float32)
    conv_w = jax.random.normal(k_w, (Cout, Cin), dtype=jnp.float32) * 0.1
    gamma = 1.0 + 0.1 * jax.random.normal(k_g, (Cout,), dtype=jnp.float32)
    beta = 0.1 * jax.random.normal(k_b, (Cout,), dtype=jnp.float32)
    running_mean = 0.1 * jax.random.normal(k_m, (Cout,), dtype=jnp.float32)
    running_var = jnp.abs(1.0 + 0.1 * jax.random.normal(
        k_v, (Cout,), dtype=jnp.float32))

    out = resdowns_forward(x, conv_w, gamma, beta, running_mean, running_var)
    out = jax.block_until_ready(out)

    ref = _reference(x, conv_w, gamma, beta, running_mean, running_var)
    assert out.shape == (N, Cout, H - 8, W - 8), out.shape
    assert jnp.allclose(out, ref, atol=1e-4, rtol=1e-4), (
        float(jnp.max(jnp.abs(out - ref))))

    print("KERNEL_OK")
</pallas_src>

<mosaic_0001>
module attributes {stable_mosaic.version = 11 : i64} {
  func.func @_resdowns_kernel(%arg0: i32, %arg1: i32, %arg2: memref<1x4x64xf32, #tpu.memory_space<vmem>>, %arg3: memref<8x4xf32, #tpu.memory_space<vmem>>, %arg4: memref<8x1xf32, #tpu.memory_space<vmem>>, %arg5: memref<1x8x64xf32, #tpu.memory_space<vmem>>) attributes {dimension_semantics = [#tpu.dimension_semantics<parallel>, #tpu.dimension_semantics<parallel>], iteration_bounds = array<i64: 2, 1>, scalar_prefetch = 0 : i64, scratch_operands = 0 : i64, tpu.core_type = #tpu.core_type<tc>, window_params = [{transform_indices = @transform_0, window_bounds = array<i64: 1, 4, 64>}, {pipeline_mode = #tpu.pipeline_mode<synchronous>, transform_indices = @transform_1, window_bounds = array<i64: 8, 4>}, {pipeline_mode = #tpu.pipeline_mode<synchronous>, transform_indices = @transform_2, window_bounds = array<i64: 8, 1>}, {transform_indices = @transform_3, window_bounds = array<i64: 1, 8, 64>}]} {
    %c0 = arith.constant 0 : index
    %c0_0 = arith.constant 0 : index
    %0 = vector.load %arg3[%c0, %c0_0] : memref<8x4xf32, #tpu.memory_space<vmem>>, vector<8x4xf32>
    %c0_1 = arith.constant 0 : index
    %c0_2 = arith.constant 0 : index
    %c0_3 = arith.constant 0 : index
    %1 = vector.load %arg2[%c0_1, %c0_2, %c0_3] : memref<1x4x64xf32, #tpu.memory_space<vmem>>, vector<1x4x64xf32>
    %2 = vector.shape_cast %1 : vector<1x4x64xf32> to vector<4x64xf32>
    %cst = arith.constant dense<0.000000e+00> : vector<8x64xf32>
    %3 = tpu.matmul %0, %2, %cst {dimension_numbers = #tpu.dot_dimension_numbers<[1], [0], [0], [1], [0, 0, 1, 1], [], []>} : vector<8x4xf32>, vector<4x64xf32>, vector<8x64xf32> -> vector<8x64xf32>
    %c0_4 = arith.constant 0 : index
    %c0_5 = arith.constant 0 : index
    %4 = vector.load %arg4[%c0_4, %c0_5] : memref<8x1xf32, #tpu.memory_space<vmem>>, vector<8x1xf32>
    %5 = vector.broadcast %4 : vector<8x1xf32> to vector<8x64xf32>
    %6 = arith.addf %3, %5 : vector<8x64xf32>
    %c0_6 = arith.constant 0 : index
    %c0_7 = arith.constant 0 : index
    %c0_8 = arith.constant 0 : index
    %7 = vector.load %arg5[%c0_6, %c0_7, %c0_8] : memref<1x8x64xf32, #tpu.memory_space<vmem>>, vector<1x8x64xf32>
    %8 = vector.shape_cast %7 : vector<1x8x64xf32> to vector<8x64xf32>
    %9 = vector.shape_cast %6 : vector<8x64xf32> to vector<1x8x64xf32>
    tpu.vector_store %arg5[%c0_6, %c0_7, %c0_8], %9 {strides = array<i32>} : memref<1x8x64xf32, #tpu.memory_space<vmem>>, vector<1x8x64xf32>,
    return
  }
  func.func @transform_0(%arg0: i32, %arg1: i32) -> (i32, i32, i32) {
    %c0_i32 = arith.constant 0 : i32
    %c0_i32_0 = arith.constant 0 : i32
    return %arg0, %c0_i32, %arg1 : i32, i32, i32
  }
  func.func @transform_1(%arg0: i32, %arg1: i32) -> (i32, i32) {
    %c0_i32 = arith.constant 0 : i32
    %c0_i32_0 = arith.constant 0 : i32
    %c0_i32_1 = arith.constant 0 : i32
    return %c0_i32, %c0_i32_0 : i32, i32
  }
  func.func @transform_2(%arg0: i32, %arg1: i32) -> (i32, i32) {
    %c0_i32 = arith.constant 0 : i32
    %c0_i32_0 = arith.constant 0 : i32
    %c0_i32_1 = arith.constant 0 : i32
    return %c0_i32, %c0_i32_0 : i32, i32
  }
  func.func @transform_3(%arg0: i32, %arg1: i32) -> (i32, i32, i32) {
    %c0_i32 = arith.constant 0 : i32
    %c0_i32_0 = arith.constant 0 : i32
    return %arg0, %c0_i32, %arg1 : i32, i32, i32
  }
}

</mosaic_0001>

<bundles_post_ra>
// kernel: resdowns_forward.1
= control target key start
LH: loop header
LB: loop body
LE: loop exit
PB: predicated region body
PF: predicated region fallthrough
CT: control target
= control target key end

     0   :  { %s391_s12 = smov 0   ;;  %s393_s13 = smov 0   ;;  %s427_s0 = inlined_call_operand.vmem [shape: f32[2,4,64], index: 0, kind: input, shape index: {}]   ;;  %s428_s1 = inlined_call_operand.vmem [shape: f32[8,4], index: 1, kind: input, shape index: {}]   ;;  %s429_s2 = inlined_call_operand.vmem [shape: f32[8,1], index: 2, kind: input, shape index: {}]   ;;  %s430_s3 = inlined_call_operand.vmem [shape: f32[2,8,64], index: 3, kind: output, shape index: {}]  }
   0x1   :  { %s395_s14 = smov 0  }
   0x2 LB: > { %s25_s15 = sadd.s32 1, %s364_s13  ;;  %p313_p0 = scmp.ge.s32.totalorder %s368_s14, 1  ;;  %s368_s14 = sphi %s395_s14, %s13_s14   ;;  %s364_s13 = sphi %s393_s13, %s432_s13   ;;  %s360_s12 = sphi %s391_s12, %s431_s12  }
   0x3   : > { %p27_p1 = scmp.ge.s32.totalorder %s25_s15, 2  ;;  %p155_p2 = scmp.lt.s32.totalorder %s368_s14, 3 }
   0x5   : > { %s434_s15 = smov (%p27_p1, %s25_s15), 0  ;;  %p156_p3 = pnand %p313_p0, %p155_p2 }
   0x6   : > { %p183_p4 = scmp.lt.s32.totalorder (!%p156_p3), %s360_s12, 1 }
   0x7   : > { %159 = sbr.rel (%p156_p3) target bundleno = 146 (0x92), region = 32 }
   0xc   : > { %v199_v0 = vld [vmem:[%s429_s2] sm:$0xff]  ;;  %v370_v1 = vmov 0   ;;  %s436_s12 = smov (!%p183_p4, %s360_s12), 1  ;;  %vm209_vm0 = vcmask 1043456   ;;  %vm205_vm1 = vcmask 31744   ;;  %vm233_vm2 = vcmask 523264  }
   0xd   : > { %345 = vset.pattern.permute.xlu0 %v370_v1  ;;  %s314_s18 = sshll.u32 %s436_s12, 2  ;;  %v197_v2 = vld [vmem:[%s428_s1] sm:$0xff]  ;;  %s315_s24 = sshll.u32 %s436_s12, 3 }
   0xe   : > { %202 = vperm.xlu0 %345, %v199_v0   ;;  %s189_s21 = scalar_lea.vmem %s427_s0, %s314_s18  ;;  %s196_s27 = scalar_lea.vmem %s430_s3, %s315_s24 }
   0xf   : > { %v198_v3 = vld [vmem:[%s189_s21] sm:$0xf] }
  0x10   : > { %316 = vmatpush.msk.msra.mxu0 %vm209_vm0, %v198_v3 }
  0x11   : > { %317 = vmatmul.msk.f32.vlgmr.msra.gmra.mxu0 %vm205_vm1, %v197_v2 }
  0x80   : > { %v203_v4 = vpop.permute.xlu0 %202 }
  0x8e   : > { %v230_v5 = vpop.f32.mrf.mxu0 }
  0x8f   : > { %v231_v6 = vadd.f32 %v230_v5, %v203_v4 }
  0x91   : > { %234 = vst.msk [vmem:[%s196_s27] sm:$0xff] %vm233_vm2, %v231_v6 }
  0x92 PF: > { %s13_s14 = sadd.s32 1, %s368_s14   ;;  %s431_s12 = smov %s364_s13 }
  0x93   : > { %p10_p5 = scmp.ge.s32.totalorder %s13_s14, 4   ;;  %s432_s13 = smov %s434_s15 }
  0x95   :  { %12 = sbr.rel (!%p10_p5) target bundleno = 2 (0x2), region = 62 }

</bundles_post_ra>
